<compile_context>
chip_gen: v6e
topology: v6e:2x2x1
jax: 0.10.0
libtpu: 0.0.40
codegen_flags: <defaults>
</compile_context>

<pallas_src>
import functools

import jax
import jax.numpy as jnp
from jax.experimental import pallas as pl
from jax.experimental.pallas import tpu as pltpu


def _seq_pool_kernel(nblk_ref, emb_ref, len_ref, out_ref, acc_ref, *, mode):
    """Masked sequence pooling over the T axis of one (TB, TT, E) tile."""
    bi = pl.program_id(0)
    ti = pl.program_id(1)
    nt = pl.num_programs(1)
    tb, tt, _ = emb_ref.shape

    @pl.when(ti == 0)
    def _init():
        if mode == 'max':
            acc_ref[...] = jnp.full_like(acc_ref, -1e9)
        else:
            acc_ref[...] = jnp.zeros_like(acc_ref)

    # Fully padded T blocks were aliased to the last valid block in the
    # index_map (so they are never re-DMA'd); skip their compute too.
    @pl.when(ti < nblk_ref[bi])
    def _accumulate():
        emb = emb_ref[...]                               # (TB, TT, E), input dtype
        lengths = len_ref[...]                           # (TB, 1) int32
        t_pos = (jax.lax.broadcasted_iota(jnp.int32, (tb, tt, 1), 1)
                 + ti * tt)                              # global T positions
        mask = t_pos < lengths[:, :, None]               # (TB, TT, 1) bool
        if mode == 'max':
            neg = jnp.array(-1e9, dtype=emb.dtype)
            blk_max = jnp.max(jnp.where(mask, emb, neg), axis=1)        # (TB, E)
            acc_ref[...] = jnp.maximum(acc_ref[...], blk_max.astype(jnp.float32))
        else:
            zero = jnp.array(0, dtype=emb.dtype)
            masked = jnp.where(mask, emb, zero)                         # (TB, TT, E)
            acc_ref[...] += jnp.sum(masked, axis=1, dtype=jnp.float32)  # f32 accum

    @pl.when(ti == nt - 1)
    def _finalize():
        result = acc_ref[...]                            # (TB, E) f32
        if mode == 'mean':
            # One exact reciprocal per row, then a broadcast multiply.
            inv = pl.reciprocal(len_ref[...].astype(jnp.float32) + 1e-8)  # (TB, 1)
            result = result * inv
        out_ref[...] = result.astype(out_ref.dtype)


def _pick_tiles(B, T, E, itemsize):
    """Pick (TB, TT) so the double-buffered embedding tile stays well inside
    scoped VMEM on every chip (v7x has half the VMEM of v5e/v6e)."""
    try:
        vmem_bytes = pltpu.get_tpu_info().vmem_capacity_bytes
    except Exception:
        vmem_bytes = 64 * 1024 * 1024        # v7x per-TC VMEM (smallest of the fleet)
    budget = vmem_bytes // 16                # per emb buffer; x2 for double buffering

    tb = B if B <= 256 else 256              # 256 is sublane-aligned (multiple of 8)
    row_bytes = max(1, tb * E * itemsize)    # bytes per T step of one tile
    max_tt = max(1, budget // row_bytes)
    if T <= max_tt:
        tt = T                               # full T dim is always a legal block dim
    else:
        tt = max(8, (max_tt // 8) * 8)       # (8, 128) tiling: TT must be 8-aligned
    return tb, tt


def sequence_pooling(uiseq_embed_list, user_behavior_length, mode='mean',
                     b_tile=None, t_tile=None):
    """Pallas equivalent of SequencePoolingLayer(mode)([emb, lengths])."""
    if mode not in ('sum', 'mean', 'max'):
        raise ValueError('parameter mode should in [sum, mean, max]')
    # TODO(synk): supports_masking=True branch (explicit float mask input) is not
    # implemented; only the (embeddings, lengths) path of the module is translated.
    B, T, E = uiseq_embed_list.shape
    lengths = user_behavior_length.reshape(B, 1).astype(jnp.int32)

    tb, tt = _pick_tiles(B, T, E, uiseq_embed_list.dtype.itemsize)
    if b_tile is not None:
        tb = b_tile
    if t_tile is not None:
        tt = t_tile
    nb = pl.cdiv(B, tb)
    nt = pl.cdiv(T, tt)

    # Per-B-tile number of T blocks containing any valid rows. Blocks past this
    # are aliased in the index_map (never DMA'd again) and skipped in-kernel.
    len_flat = lengths.reshape(B)
    pad = nb * tb - B
    if pad:
        len_flat = jnp.concatenate([len_flat, jnp.zeros((pad,), jnp.int32)])
    t_blocks_needed = (
        (jnp.max(len_flat.reshape(nb, tb), axis=1) + tt - 1) // tt
    ).astype(jnp.int32)

    kernel = functools.partial(_seq_pool_kernel, mode=mode)
    out2d = pl.pallas_call(
        kernel,
        out_shape=jax.ShapeDtypeStruct((B, E), uiseq_embed_list.dtype),
        grid_spec=pltpu.PrefetchScalarGridSpec(
            num_scalar_prefetch=1,
            grid=(nb, nt),
            in_specs=[
                pl.BlockSpec(
                    (tb, tt, E),
                    lambda bi, ti, nblk: (
                        bi, jnp.minimum(ti, jnp.maximum(nblk[bi] - 1, 0)), 0)),
                pl.BlockSpec((tb, 1), lambda bi, ti, nblk: (bi, 0)),
            ],
            out_specs=pl.BlockSpec((tb, E), lambda bi, ti, nblk: (bi, 0)),
            scratch_shapes=[pltpu.VMEM((tb, E), jnp.float32)],
        ),
        compiler_params=pltpu.CompilerParams(
            dimension_semantics=("parallel", "arbitrary")),
    )(t_blocks_needed, uiseq_embed_list, lengths)

    return out2d[:, None, :]        # (B, 1, E), matching torch.unsqueeze(dim=1)


def _reference(uiseq_embed_list, user_behavior_length, mode):
    """Pure-JAX reference mirroring the PyTorch forward."""
    B, T, E = uiseq_embed_list.shape
    mask = (jnp.arange(T)[None, :] < user_behavior_length).astype(jnp.float32)
    mask = mask[:, :, None]                                   # (B, T, 1)
    if mode == 'max':
        hist = uiseq_embed_list - (1.0 - mask) * 1e9
        return jnp.max(hist, axis=1, keepdims=True)
    hist = jnp.sum(uiseq_embed_list * mask, axis=1)
    if mode == 'mean':
        hist = hist / (user_behavior_length.astype(jnp.float32) + 1e-8)
    return hist[:, None, :]


if __name__ == "__main__":
    key = jax.random.PRNGKey(0)
    ok = True

    # Small shape matching the DSSM usage (single-tile path).
    k_emb, k_len, key = jax.random.split(key, 3)
    B, T, E = 4, 8, 32
    emb = jax.random.normal(k_emb, (B, T, E), dtype=jnp.float32)
    lens = jax.random.randint(k_len, (B, 1), 1, T + 1, dtype=jnp.int32)
    for mode in ('sum', 'mean', 'max'):
        out = jax.block_until_ready(sequence_pooling(emb, lens, mode=mode))
        ref = _reference(emb, lens, mode)
        ok &= bool(out.shape == (B, 1, E) and out.dtype == emb.dtype)
        ok &= bool(jnp.allclose(out, ref, atol=1e-5, rtol=1e-5))

    # Exercise the tiled multi-T-block path (accumulator + padded-block skip).
    k_emb, k_len = jax.random.split(key)
    B, T, E = 16, 24, 128
    emb = jax.random.normal(k_emb, (B, T, E), dtype=jnp.float32)
    lens = jax.random.randint(k_len, (B, 1), 1, T + 1, dtype=jnp.int32)
    for mode in ('sum', 'mean', 'max'):
        out = jax.block_until_ready(
            sequence_pooling(emb, lens, mode=mode, b_tile=8, t_tile=8))
        ref = _reference(emb, lens, mode)
        ok &= bool(out.shape == (B, 1, E) and out.dtype == emb.dtype)
        ok &= bool(jnp.allclose(out, ref, atol=1e-5, rtol=1e-5))

    print("KERNEL_OK" if ok else "KERNEL_MISMATCH")
</pallas_src>

<mosaic_0001>
module attributes {stable_mosaic.version = 11 : i64} {
  func.func @_seq_pool_kernel(%arg0: i32, %arg1: i32, %arg2: memref<1xi32, #tpu.memory_space<smem>>, %arg3: memref<4x8x32xf32, #tpu.memory_space<vmem>>, %arg4: memref<4x1xi32, #tpu.memory_space<vmem>>, %arg5: memref<4x32xf32, #tpu.memory_space<vmem>>, %arg6: memref<4x32xf32, #tpu.memory_space<vmem>>) attributes {dimension_semantics = [#tpu.dimension_semantics<parallel>, #tpu.dimension_semantics<arbitrary>], iteration_bounds = array<i64: 1, 1>, scalar_prefetch = 1 : i64, scratch_operands = 1 : i64, tpu.core_type = #tpu.core_type<tc>, window_params = [{transform_indices = @transform_0, window_bounds = array<i64: 4, 8, 32>}, {transform_indices = @transform_1, window_bounds = array<i64: 4, 1>}, {transform_indices = @transform_2, window_bounds = array<i64: 4, 32>}]} {
    %c0_i32 = arith.constant 0 : i32
    %0 = arith.cmpi eq, %arg1, %c0_i32 : i32
    %1 = arith.extui %0 : i1 to i32
    %c0_i32_0 = arith.constant 0 : i32
    %2 = arith.cmpi ne, %1, %c0_i32_0 : i32
    scf.if %2 {
      %cst = arith.constant 0.000000e+00 : f32
      %11 = vector.broadcast %cst : f32 to vector<4x32xf32>
      %c0 = arith.constant 0 : index
      %c0_4 = arith.constant 0 : index
      %12 = vector.load %arg6[%c0, %c0_4] : memref<4x32xf32, #tpu.memory_space<vmem>>, vector<4x32xf32>
      tpu.vector_store %arg6[%c0, %c0_4], %11 {strides = array<i32>} : memref<4x32xf32, #tpu.memory_space<vmem>>, vector<4x32xf32>,
    } else {
    }
    %3 = arith.index_cast %arg0 : i32 to index
    %4 = memref.load %arg2[%3] : memref<1xi32, #tpu.memory_space<smem>>
    %5 = arith.cmpi slt, %arg1, %4 : i32
    %6 = arith.extui %5 : i1 to i32
    %c0_i32_1 = arith.constant 0 : i32
    %7 = arith.cmpi ne, %6, %c0_i32_1 : i32
    scf.if %7 {
      %c0 = arith.constant 0 : index
      %c0_4 = arith.constant 0 : index
      %c0_5 = arith.constant 0 : index
      %11 = vector.load %arg3[%c0, %c0_4, %c0_5] : memref<4x8x32xf32, #tpu.memory_space<vmem>>, vector<4x8x32xf32>
      %c0_6 = arith.constant 0 : index
      %c0_7 = arith.constant 0 : index
      %12 = vector.load %arg4[%c0_6, %c0_7] : memref<4x1xi32, #tpu.memory_space<vmem>>, vector<4x1xi32>
      %13 = tpu.iota {dimensions = array<i32: 1>} : vector<4x8x1xi32>
      %c8_i32 = arith.constant 8 : i32
      %14 = arith.muli %arg1, %c8_i32 : i32
      %15 = vector.broadcast %14 : i32 to vector<4x8x1xi32>
      %16 = arith.addi %13, %15 : vector<4x8x1xi32>
      %17 = vector.shape_cast %12 : vector<4x1xi32> to vector<4x1x1xi32>
      %18 = vector.broadcast %17 : vector<4x1x1xi32> to vector<4x8x1xi32>
      %19 = arith.cmpi slt, %16, %18 : vector<4x8x1xi32>
      %cst = arith.constant 0.000000e+00 : f32
      %20 = vector.shape_cast %19 : vector<4x8x1xi1> to vector<4x8x1xi1>
      %21 = vector.broadcast %20 : vector<4x8x1xi1> to vector<4x8x32xi1>
      %22 = vector.broadcast %cst : f32 to vector<4x8x32xf32>
      %23 = arith.select %21, %11, %22 : vector<4x8x32xi1>, vector<4x8x32xf32>
      %c0_8 = arith.constant 0 : index
      %c0_9 = arith.constant 0 : index
      %24 = vector.load %arg6[%c0_8, %c0_9] : memref<4x32xf32, #tpu.memory_space<vmem>>, vector<4x32xf32>
      %cst_10 = arith.constant dense<0.000000e+00> : vector<4x32xf32>
      %25 = vector.multi_reduction <add>, %23, %cst_10 [1] : vector<4x8x32xf32> to vector<4x32xf32>
      %26 = arith.addf %24, %25 : vector<4x32xf32>
      %c0_11 = arith.constant 0 : index
      %c0_12 = arith.constant 0 : index
      %27 = vector.load %arg6[%c0_11, %c0_12] : memref<4x32xf32, #tpu.memory_space<vmem>>, vector<4x32xf32>
      tpu.vector_store %arg6[%c0_11, %c0_12], %26 {strides = array<i32>} : memref<4x32xf32, #tpu.memory_space<vmem>>, vector<4x32xf32>,
    } else {
    }
    %c0_i32_2 = arith.constant 0 : i32
    %8 = arith.cmpi eq, %arg1, %c0_i32_2 : i32
    %9 = arith.extui %8 : i1 to i32
    %c0_i32_3 = arith.constant 0 : i32
    %10 = arith.cmpi ne, %9, %c0_i32_3 : i32
    scf.if %10 {
      %c0 = arith.constant 0 : index
      %c0_4 = arith.constant 0 : index
      %11 = vector.load %arg6[%c0, %c0_4] : memref<4x32xf32, #tpu.memory_space<vmem>>, vector<4x32xf32>
      %c0_5 = arith.constant 0 : index
      %c0_6 = arith.constant 0 : index
      %12 = vector.load %arg5[%c0_5, %c0_6] : memref<4x32xf32, #tpu.memory_space<vmem>>, vector<4x32xf32>
      tpu.vector_store %arg5[%c0_5, %c0_6], %11 {strides = array<i32>} : memref<4x32xf32, #tpu.memory_space<vmem>>, vector<4x32xf32>,
    } else {
    }
    return
  }
  func.func @transform_0(%arg0: i32, %arg1: i32, %arg2: memref<1xi32, #tpu.memory_space<smem>>) -> (i32, i32, i32) {
    %0 = arith.index_cast %arg0 : i32 to index
    %1 = memref.load %arg2[%0] : memref<1xi32, #tpu.memory_space<smem>>
    %c1_i32 = arith.constant 1 : i32
    %2 = arith.subi %1, %c1_i32 : i32
    %c0_i32 = arith.constant 0 : i32
    %3 = arith.maxsi %2, %c0_i32 : i32
    %4 = arith.minsi %arg1, %3 : i32
    %c0_i32_0 = arith.constant 0 : i32
    %c0_i32_1 = arith.constant 0 : i32
    return %arg0, %4, %c0_i32_0 : i32, i32, i32
  }
  func.func @transform_1(%arg0: i32, %arg1: i32, %arg2: memref<1xi32, #tpu.memory_space<smem>>) -> (i32, i32) {
    %c0_i32 = arith.constant 0 : i32
    %c0_i32_0 = arith.constant 0 : i32
    return %arg0, %c0_i32 : i32, i32
  }
  func.func @transform_2(%arg0: i32, %arg1: i32, %arg2: memref<1xi32, #tpu.memory_space<smem>>) -> (i32, i32) {
    %c0_i32 = arith.constant 0 : i32
    %c0_i32_0 = arith.constant 0 : i32
    return %arg0, %c0_i32 : i32, i32
  }
}

</mosaic_0001>

<bundles_post_ra>
// kernel: tpu_custom_call.1
= control target key start
LH: loop header
LB: loop body
LE: loop exit
PB: predicated region body
PF: predicated region fallthrough
CT: control target
= control target key end

     0   :  { %9 = vsyncpa [#allocation6], 0  ;;  %s317_s0 = inlined_call_operand.<no memory space> [shape: s32[1], index: 0, kind: input, shape index: {}]   ;;  %s318_s1 = inlined_call_operand.hbm [shape: f32[4,8,32], index: 1, kind: input, shape index: {}]   ;;  %s319_s2 = inlined_call_operand.vmem [shape: s32[4,1], index: 2, kind: input, shape index: {}]   ;;  %s320_s3 = inlined_call_operand.hbm [shape: f32[4,32], index: 3, kind: output, shape index: {}]  }
   0x1   :  { %10 = vsyncpa [#allocation7], 0  ;;  %s198_s14 = sadd.s32 4294967295, %s317_s0  ;;  %s262_s15 = smov [#allocation5]  }
   0x2   :  { %p15_p0 = scmp.gt.s32.totalorder %s198_s14, 0  ;;  %s24_s16 = sshll.u32 %s262_s15, 4  ;;  %s25_s16 = int_to_ptr.vmem [resolvable:$true] %s24_s16 }
   0x3   :  { %s218_s24 = scalar_lea.hbm %s318_s1, 512 }
   0x4   :  { %s322_s14 = smov (!%p15_p0, %s198_s14), 0 }
   0x5   :  { %s324_s14 = smov (%p15_p0, %s322_s14), 0 }
   0x6   :  { %s200_s17 = sshll.u32 %s324_s14, 7 }
   0x7   :  { %s23_s20 = scalar_lea.hbm %s318_s1, %s200_s17 }
   0x8   :  { %s216_s21 = scalar_lea.hbm %s23_s20, 512  ;;  %p219_p2 = scmp.lt.s32.totalorder %s23_s20, %s318_s1 }
   0x9   :  { %p217_p1 = scmp.ne.s32.totalorder %s23_s20, %s216_s21  ;;  %p220_p3 = scmp.lt.s32.totalorder %s218_s24, %s216_s21 }
   0xb   :  { %p221_p4 = por %p220_p3, %p219_p2 }
   0xd   :  { %p222_p5 = pnand %p221_p4, %p217_p1 }
   0xf   :  { %225 = shalt.err (!%p222_p5)
}
  0x10   :  { %s226_s27 = scalar_lea.vmem %s25_s16, 512  ;;  %p231_p7 = scmp.lt.s32.totalorder %s25_s16, %s25_s16 }
  0x11   :  { %p227_p6 = scmp.ne.s32.totalorder %s25_s16, %s226_s27  ;;  %p232_p8 = scmp.lt.s32.totalorder %s226_s27, %s226_s27 }
  0x13   :  { %p233_p9 = por %p232_p8, %p231_p7 }
  0x15   :  { %p234_p10 = pnand %p233_p9, %p227_p6 }
  0x17   :  { %237 = shalt.err (!%p234_p10)
}
  0x18   :  { %s263_s28 = smov 128   ;;  %s264_s29 = smov 8  }
  0x19   :  { %30 = dma.hbm_to_vmem [thread:$0]  %s23_s20, 512, %s25_s16, [#allocation6], %s263_s28, %s263_s28, %s264_s29  }
  0x1a   :  { %258 = dma.done.wait [#allocation6], 512  }
  0x1b   :  { %259 = vsyncadd [#allocation6], 4294966784  ;;  %vm46_vm0 = vcmask 257024   ;;  %v265_v0 = vmov 0.0   ;;  %p202_p11 = scmp.le.s32.totalorder %s317_s0, 0 }
  0x1c   :  { %47 = vst.msk [vmem:[#allocation2] sm:$0xf] %vm46_vm0, %v265_v0 }
  0x1d   :  { %52 = sbr.rel (%p202_p11) target bundleno = 196 (0xc4), region = 21 }
  0x22   :  { %v58_v1 = vlaneseq  ;;  %v266_v2 = vmov 0   ;;  %v267_v4 = vmov 1966171168   ;;  %v53_v23 = vld [vmem:[#allocation5] sm:$0xff]  ;;  %vm132_vm5 = vcmask 261120   ;;  %v55_v25 = vld [vmem:[#allocation5 + $0x10] sm:$0xff] }
  0x23   :  { %214 = vset.pattern.permute.xlu0 %v266_v2  ;;  %215 = vset.pattern.permute.xlu1 %v266_v2  ;;  %v72_v5 = vunpack.c.l.s4 %v267_v4  ;;  %v203_v6 = vld.sshfl [vmem:[%s319_s2] sm:$0x33 pattern:$0x75316420]  ;;  %v54_v29 = vld [vmem:[#allocation5 + $0x8] sm:$0xff]  ;;  %vm165_vm10 = vcmask 1041409  }
  0x24   :  { %v59_v3 = vshrl.u32 %v58_v1, 7  ;;  %v70_v8 = vcombine.high %v203_v6, %v203_v6  ;;  %v56_v34 = vld [vmem:[#allocation5 + $0x18] sm:$0xff]  ;;  %vm167_vm11 = vcmask 1042434   ;;  %vm169_vm12 = vcmask 1043459  }
  0x25   :  { %v73_v7 = vunpack.c.0.s8 %v72_v5  ;;  %v131_v63 = vld [vmem:[#allocation2] sm:$0xf] }
  0x26   :  { %v89_v10 = vsub.s32 0, %v59_v3 }
  0x27   :  { %v76_v9 = vsub.s32 %v73_v7, %v59_v3 }
  0x29   :  { %v77_v11 = vrot.slane %v203_v6, %v76_v9  ;;  %v84_v12 = vrot.slane %v70_v8, %v76_v9 }
  0x2b   :  { %v90_v13 = vrot.slane %v77_v11, %v89_v10  ;;  %v85_v14 = vcombine.high %v77_v11, %v77_v11  ;;  %v94_v15 = vrot.slane %v84_v12, %v89_v10  ;;  %v86_v16 = vcombine.high %v84_v12, %v84_v12 }
  0x2d   :  { %vm103_vm1 = vcmp.lt.s32.totalorder %v59_v3, %v90_v13  ;;  %v98_v17 = vrot.slane %v85_v14, %v89_v10  ;;  %vm104_vm2 = vcmp.lt.s32.totalorder %v59_v3, %v94_v15  ;;  %v102_v18 = vrot.slane %v86_v16, %v89_v10 }
  0x2e   :  { %v107_v19 = vsel %vm103_vm1, 1, %v266_v2  ;;  %v108_v21 = vsel %vm104_vm2, 1, %v266_v2 }
  0x2f   :  { %112 = vperm.xlu0 %214, %v107_v19   ;;  %vm105_vm3 = vcmp.lt.s32.totalorder %v59_v3, %v98_v17  ;;  %vm106_vm4 = vcmp.lt.s32.totalorder %v59_v3, %v102_v18 }
  0x30   :  { %v109_v20 = vsel %vm105_vm3, 1, %v266_v2  ;;  %v110_v22 = vsel %vm106_vm4, 1, %v266_v2 }
  0x31   :  { %118 = vperm.xlu1 %215, %v109_v20  }
  0x33   :  { %115 = vperm.xlu0 %214, %v108_v21  }
  0x35   :  { %121 = vperm.xlu1 %215, %v110_v22  }
  0xaa   :  { %v113_v24 = vpop.permute.xlu0 %112 }
  0xab   :  { %vm123_vm6 = vcmp.eq.s32.totalorder %v113_v24, 1 }
  0xac   :  { %v127_v26 = vsel %vm123_vm6, %v53_v23, 0.0  ;;  %v119_v27 = vpop.permute.xlu1 %118 }
  0xad   :  { %v133_v28 = vsel %vm132_vm5, %v127_v26, 0.0  ;;  %vm125_vm7 = vcmp.eq.s32.totalorder %v119_v27, 1 }
  0xae   :  { %v134_v30 = vrot.slane %v133_v28, 4  ;;  %v129_v31 = vsel %vm125_vm7, %v55_v25, 0.0  ;;  %v116_v32 = vpop.permute.xlu0 %115 }
  0xaf   :  { %v147_v33 = vsel %vm132_vm5, %v129_v31, 0.0  ;;  %vm124_vm8 = vcmp.eq.s32.totalorder %v116_v32, 1 }
  0xb0   :  { %v135_v35 = vadd.f32 %v134_v30, %v133_v28  ;;  %v148_v36 = vrot.slane %v147_v33, 4  ;;  %v128_v37 = vsel %vm124_vm8, %v54_v29, 0.0  ;;  %v122_v38 = vpop.permute.xlu1 %121 }
  0xb1   :  { %v140_v39 = vsel %vm132_vm5, %v128_v37, 0.0  ;;  %vm126_vm9 = vcmp.eq.s32.totalorder %v122_v38, 1 }
  0xb2   :  { %v136_v40 = vrot.slane %v135_v35, 2  ;;  %v149_v41 = vadd.f32 %v148_v36, %v147_v33  ;;  %v141_v42 = vrot.slane %v140_v39, 4  ;;  %v130_v43 = vsel %vm126_vm9, %v56_v34, 0.0 }
  0xb3   :  { %v154_v44 = vsel %vm132_vm5, %v130_v43, 0.0 }
  0xb4   :  { %v137_v45 = vadd.f32 %v136_v40, %v135_v35  ;;  %v150_v46 = vrot.slane %v149_v41, 2  ;;  %v142_v47 = vadd.f32 %v141_v42, %v140_v39  ;;  %v155_v48 = vrot.slane %v154_v44, 4 }
  0xb6   :  { %v151_v49 = vadd.f32 %v150_v46, %v149_v41  ;;  %v143_v50 = vrot.slane %v142_v47, 2  ;;  %v156_v51 = vadd.f32 %v155_v48, %v154_v44  ;;  %v138_v52 = vrot.slane %v137_v45, 1 }
  0xb8   :  { %v144_v53 = vadd.f32 %v143_v50, %v142_v47  ;;  %v157_v54 = vrot.slane %v156_v51, 2  ;;  %v152_v55 = vrot.slane %v151_v49, 1  ;;  %v139_v58 = vadd.f32 %v138_v52, %v137_v45 }
  0xba   :  { %v145_v56 = vrot.slane %v144_v53, 1  ;;  %v158_v57 = vadd.f32 %v157_v54, %v156_v51  ;;  %v153_v61 = vadd.f32 %v152_v55, %v151_v49 }
  0xbc   :  { %v146_v59 = vadd.f32 %v145_v56, %v144_v53  ;;  %v159_v60 = vrot.slane %v158_v57, 1 }
  0xbe   :  { %v166_v62 = vsel %vm165_vm10, %v146_v59, %v139_v58  ;;  %v160_v0 = vadd.f32 %v159_v60, %v158_v57 }
  0xbf   :  { %v168_v1 = vsel %vm167_vm11, %v153_v61, %v166_v62 }
  0xc0   :  { %v170_v2 = vsel %vm169_vm12, %v160_v0, %v168_v1 }
  0xc1   :  { %v172_v3 = vadd.f32 %v170_v2, %v131_v63 }
  0xc3   :  { %174 = vst.msk [vmem:[#allocation2] sm:$0xf] %vm46_vm0, %v172_v3 }
  0xc4 PF:  { %s268_s0 = smov [#allocation8]  }
  0xc5   :  { %s187_s2 = sshll.u32 %s268_s0, 4  ;;  %s188_s2 = int_to_ptr.vmem [resolvable:$true] %s187_s2 }
  0xc6   :  { %s238_s6 = scalar_lea.vmem %s188_s2, 64  ;;  %p243_p13 = scmp.lt.s32.totalorder %s188_s2, %s188_s2 }
  0xc7   :  { %p239_p12 = scmp.ne.s32.totalorder %s188_s2, %s238_s6  ;;  %p244_p0 = scmp.lt.s32.totalorder %s238_s6, %s238_s6 }
  0xc9   :  { %p245_p1 = por %p244_p0, %p243_p13 }
  0xca   :  { %v178_v4 = vld [vmem:[#allocation2] sm:$0xf] }
  0xcb   :  { %180 = vst.msk [vmem:[#allocation8] sm:$0xf] %vm46_vm0, %v178_v4  ;;  %p246_p2 = pnand %p245_p1, %p239_p12 }
  0xcd   :  { %249 = shalt.err (!%p246_p2)
}
  0xce   :  { %190 = dma.vmem_to_hbm [thread:$0]  %s188_s2, 64, %s320_s3, [#allocation7]  }
  0xcf   :  { %260 = dma.done.wait [#allocation7], 64  }
  0xd0   :  { %261 = vsyncadd [#allocation7], 4294967232 }
  0xd1   :  { %194 = vsyncpa [#allocation6], 1 }
  0xd2   :  { %195 = vsyncpa [#allocation7], 1 }

</bundles_post_ra>
